<compile_context>
chip_gen: v5e
topology: v5e:2x2
jax: 0.10.0
libtpu: 0.0.40
codegen_flags: <defaults>
</compile_context>

<pallas_src>
import math
import functools

import jax
import jax.numpy as jnp
from jax.experimental import pallas as pl
from jax.experimental.pallas import tpu as pltpu


# ----------------------------- Pallas kernel --------------------------------

def _mha_mmlora3_kernel(x_ref,
                        wq_ref, wk_ref, wv_ref,
                        bq_ref, bk_ref, bv_ref,
                        ak_ref, bk_lo_ref, av_ref, bv_lo_ref,
                        wproj_ref, bproj_ref,
                        o_ref,
                        *, num_heads, scale, approx_recip):
    # Block shapes (one grid step == one batch element):
    #   x_ref      : (1, N, C)  f32
    #   wq/wk/wv   : (H, C, hd) compute dtype      bq/bk/bv : (H, 1, hd) f32
    #   ak/av      : (C, nA*r)  f32  (stacked LoRA A^T, adapters side by side)
    #   bk_lo/bv_lo: (H, nA*r, hd) f32 (stacked LoRA B^T, pre-split per head)
    #   wproj_ref  : (H, hd, C) compute dtype      bproj    : (1, C)  f32
    #   o_ref      : (1, N, C)  f32
    _, N, C = x_ref.shape
    H = num_heads
    f32 = jnp.float32

    x32 = x_ref[0]                                  # (N, C), f32
    xcd = x32.astype(wq_ref.dtype)                  # bf16 on the fast path
    xb = jnp.broadcast_to(xcd, (H, N, C))           # head-batched view of x

    # --- per-head q/k/v projections: batched MXU matmuls, f32 accumulation ---
    qh = jnp.einsum("hnc,hcd->hnd", xb, wq_ref[...],
                    preferred_element_type=f32) + bq_ref[...]
    kh = jnp.einsum("hnc,hcd->hnd", xb, wk_ref[...],
                    preferred_element_type=f32) + bk_ref[...]
    vh = jnp.einsum("hnc,hcd->hnd", xb, wv_ref[...],
                    preferred_element_type=f32) + bv_ref[...]

    # --- stacked LoRA contributions to k and v (activation form, f32):
    #     sum_ii x A_ii^T B_ii^T == (x [A_0^T|A_1^T|...]) [B_0^T;B_1^T;...] ---
    tk = jnp.dot(x32, ak_ref[...], preferred_element_type=f32)     # (N, nA*r)
    tv = jnp.dot(x32, av_ref[...], preferred_element_type=f32)
    R = tk.shape[-1]
    kh = kh + jnp.einsum("hnr,hrd->hnd", jnp.broadcast_to(tk, (H, N, R)),
                         bk_lo_ref[...], preferred_element_type=f32)
    vh = vh + jnp.einsum("hnr,hrd->hnd", jnp.broadcast_to(tv, (H, N, R)),
                         bv_lo_ref[...], preferred_element_type=f32)

    qh = qh * scale                                 # fold attention scale once

    # --- attention: batched over heads, contraction on last dims (no .T) ---
    s = jnp.einsum("hnd,hmd->hnm", qh, kh, preferred_element_type=f32)
    # TODO(synk): a non-None attn_mask (num_heads, N, N) would be added to `s`
    # here before the softmax; attn_mask is None in this configuration.
    s = s - jnp.max(s, axis=-1, keepdims=True)
    p = jnp.exp(s)
    p = p * pl.reciprocal(jnp.sum(p, axis=-1, keepdims=True), approx=approx_recip)
    oh = jnp.einsum("hnm,hmd->hnd", p, vh, preferred_element_type=f32)

    # --- output projection fused per head against pre-split W_proj^T rows ---
    # (At hd=8 the per-head K is tiny, but this avoids any in-kernel head
    #  relayout; at large hd/C, assemble (N, C) and use one K=C matmul instead.)
    yh = jnp.einsum("hnd,hdc->hnc", oh.astype(wproj_ref.dtype), wproj_ref[...],
                    preferred_element_type=f32)      # (H, N, C)
    y = bproj_ref[...]                               # (1, C), broadcasts
    for h in range(H):                               # unrolled leading-dim adds
        y = y + yh[h]
    o_ref[0] = y.astype(o_ref.dtype)                 # direct per-batch store


# ---------------------- one-time weight preparation --------------------------

def prepare_mha_params(params, *, num_heads, compute_dtype=jnp.bfloat16):
    """One-time weight layout plumbing, hoisted out of the per-call path.

    compute_dtype=bf16 feeds bf16 inputs to the MXU matmuls with f32
    accumulation; this is the right choice on v5e, v6e and v7x alike (the MXU
    is bf16-native on all three; only VPU/EUP work would need f32 and that is
    already f32 in the kernel).  Use compute_dtype=f32 for bit-strict numerics.
    """
    C = params["wproj"].shape[0]
    H = num_heads
    hd = C // H
    nA, r, _ = params["ak"].shape
    cd = compute_dtype
    f32 = jnp.float32

    def split_cols_per_head(w_t):           # (C_in, C_out) -> (H, C_in, hd)
        return jnp.transpose(w_t.reshape(C, H, hd), (1, 0, 2))

    wq, wk, wv = jnp.split(params["wqkv"], 3, axis=0)        # torch (out, in)
    bq, bk, bv = jnp.split(params["bqkv"], 3)

    # Stacked LoRA: A_ii is (r, C), B_ii is (C, r) in torch convention.
    ak_st = jnp.transpose(params["ak"], (2, 0, 1)).reshape(C, nA * r)  # [A^T..]
    av_st = jnp.transpose(params["av"], (2, 0, 1)).reshape(C, nA * r)
    bk_st = jnp.transpose(params["bk"], (0, 2, 1)).reshape(nA * r, C)  # [B^T..]
    bv_st = jnp.transpose(params["bv"], (0, 2, 1)).reshape(nA * r, C)

    def split_lora_b(b_st):                 # (nA*r, C) -> (H, nA*r, hd)
        return jnp.transpose(b_st.reshape(nA * r, H, hd), (1, 0, 2))

    return {
        "wq": split_cols_per_head(wq.T).astype(cd),
        "wk": split_cols_per_head(wk.T).astype(cd),
        "wv": split_cols_per_head(wv.T).astype(cd),
        "bq": bq.reshape(H, 1, hd).astype(f32),
        "bk": bk.reshape(H, 1, hd).astype(f32),
        "bv": bv.reshape(H, 1, hd).astype(f32),
        "ak": ak_st.astype(f32),                       # LoRA kept f32
        "bk_lo": split_lora_b(bk_st).astype(f32),
        "av": av_st.astype(f32),
        "bv_lo": split_lora_b(bv_st).astype(f32),
        "wproj": jnp.transpose(params["wproj"]).reshape(H, hd, C).astype(cd),
        "bproj": params["bproj"].reshape(1, C).astype(f32),
    }


# ------------------------------- wrapper ------------------------------------

def mha_multimaskedlora3_forward(x, x_proj, probs, prepared, *, num_heads):
    """Mirrors MultiHeadAttention_MultiMaskedLoRA3.forward -> (out, out, probs)."""
    del x_proj                               # unused by the module's forward
    B, N, C = x.shape
    hd = C // num_heads
    scale = hd ** (-0.5)
    approx = prepared["wq"].dtype == jnp.bfloat16

    kernel = functools.partial(_mha_mmlora3_kernel, num_heads=num_heads,
                               scale=scale, approx_recip=bool(approx))

    def whole(a):                            # grid-invariant, fully VMEM-resident
        nd = a.ndim
        return pl.BlockSpec(a.shape, lambda b, _nd=nd: (0,) * _nd)

    w_order = ("wq", "wk", "wv", "bq", "bk", "bv",
               "ak", "bk_lo", "av", "bv_lo", "wproj", "bproj")
    weights = [prepared[k] for k in w_order]

    # One grid step per batch element; "parallel" lets Mosaic shard the batch
    # across v7x's two TensorCores (no effect on v5e/v6e).  At these sizes the
    # kernel is overhead-bound and everything fits trivially in VMEM; if C is
    # scaled up (>= 512-1024), tile the output-C axes of wq/wk/wv/wproj in
    # multiples of 256 (v6e/v7x MXU width; 128 on v5e), K tiles >= 256 where
    # VMEM allows, and set CompilerParams(vmem_limit_bytes=...) so resident
    # slabs + double buffering stay well under v7x's 64 MiB physical (32 MiB
    # default scoped) VMEM.  If many such layers/adapters are run, batch them
    # into one call (stack along the grid axis) before MXU-level tuning.
    out = pl.pallas_call(
        kernel,
        grid=(B,),
        out_shape=jax.ShapeDtypeStruct((B, N, C), jnp.float32),
        in_specs=[pl.BlockSpec((1, N, C), lambda b: (b, 0, 0))]
                 + [whole(w) for w in weights],
        out_specs=pl.BlockSpec((1, N, C), lambda b: (b, 0, 0)),
        compiler_params=pltpu.CompilerParams(
            dimension_semantics=("parallel",)),
    )(x.astype(jnp.float32), *weights)

    return out, out, probs


# --------------------------- pure-JAX reference ------------------------------

def mha_multimaskedlora3_reference(x, params, *, num_heads):
    """Weight-space formulation, exactly mirroring the PyTorch forward."""
    B, N, C = x.shape
    hd = C // num_heads
    scale = hd ** (-0.5)
    nA = params["ak"].shape[0]

    wq, wk, wv = jnp.split(params["wqkv"], 3, axis=0)      # each (C, C) (out, in)
    for i in range(nA):
        wk = wk + params["bk"][i] @ params["ak"][i]
        wv = wv + params["bv"][i] @ params["av"][i]
    w = jnp.concatenate([wq, wk, wv], axis=0)               # (3C, C)

    qkv = x @ w.T + params["bqkv"]                           # (B, N, 3C)
    qkv = qkv.reshape(B, N, 3, num_heads, hd).transpose(2, 0, 3, 1, 4)
    q, k, v = qkv[0], qkv[1], qkv[2]                         # (B, H, N, hd)

    attn = jnp.einsum("bhnd,bhmd->bhnm", q, k) * scale
    attn = jax.nn.softmax(attn, axis=-1)
    out = jnp.einsum("bhnm,bhmd->bhnd", attn, v)
    out = out.transpose(0, 2, 1, 3).reshape(B, N, C)
    return out @ params["wproj"].T + params["bproj"]


# ------------------------------ parameter setup ------------------------------

def make_params(key, dim, num_heads, lora_rank, num_active_adapters):
    C, r, nA = dim, lora_rank, num_active_adapters
    ks = jax.random.split(key, 8)

    def u(k, shape, s):
        return jax.random.uniform(k, shape, jnp.float32, -s, s)

    # nn.Linear weights in torch convention: (out_features, in_features).
    # The module zero-inits the LoRA B matrices; random non-zero values are
    # used here so the LoRA path actually contributes to the output.
    return {
        "wqkv": u(ks[0], (3 * C, C), 0.1),
        "bqkv": u(ks[1], (3 * C,), 0.1),
        "wproj": u(ks[2], (C, C), 0.1),
        "bproj": u(ks[3], (C,), 0.1),
        "ak": u(ks[4], (nA, r, C), 1.0 / math.sqrt(C)),   # lora_A_k_list[ii].weight
        "bk": u(ks[5], (nA, C, r), 0.05),                 # lora_B_k_list[ii].weight
        "av": u(ks[6], (nA, r, C), 1.0 / math.sqrt(C)),
        "bv": u(ks[7], (nA, C, r), 0.05),
    }


# ----------------------------------- main ------------------------------------

if __name__ == "__main__":
    B, N, C = 2, 8, 32
    num_heads = 4
    lora_rank = 10
    num_active_adapters = 3      # cur_task = 2  ->  adapters 0..2 active

    key = jax.random.PRNGKey(0)
    kx, kxp, kp = jax.random.split(key, 3)
    x = jax.random.normal(kx, (B, N, C), jnp.float32)
    x_proj = jax.random.normal(kxp, (B, N, C), jnp.float32)   # unused by forward
    probs = jnp.full((B,), 1.0 / B, jnp.float32)              # passthrough
    params = make_params(kp, C, num_heads, lora_rank, num_active_adapters)

    ref = mha_multimaskedlora3_reference(x, params, num_heads=num_heads)

    # f32 path (strict numerics; exact softmax reciprocal).  Weight prep is
    # done once and reused across calls (hoisted out of the forward).
    prep_f32 = prepare_mha_params(params, num_heads=num_heads,
                                  compute_dtype=jnp.float32)
    out, out_dup, probs_out = mha_multimaskedlora3_forward(
        x, x_proj, probs, prep_f32, num_heads=num_heads)
    out = jax.block_until_ready(out)
    assert out.shape == (B, N, C)
    err = float(jnp.max(jnp.abs(out - ref)))
    assert jnp.allclose(out, ref, rtol=1e-4, atol=1e-4), f"f32 max abs err {err}"
    assert jnp.array_equal(out_dup, out)
    assert jnp.array_equal(probs_out, probs)

    # bf16 MXU-input path (recommended on v5e / v6e / v7x), looser tolerance.
    prep_bf16 = prepare_mha_params(params, num_heads=num_heads,
                                   compute_dtype=jnp.bfloat16)
    out_bf16, _, _ = mha_multimaskedlora3_forward(
        x, x_proj, probs, prep_bf16, num_heads=num_heads)
    out_bf16 = jax.block_until_ready(out_bf16)
    err_bf = float(jnp.max(jnp.abs(out_bf16 - ref)))
    assert jnp.allclose(out_bf16, ref, rtol=3e-2, atol=3e-2), \
        f"bf16 max abs err {err_bf}"

    print("KERNEL_OK")
</pallas_src>

<mosaic_0001>
module attributes {stable_mosaic.version = 11 : i64} {
  func.func @_mha_mmlora3_kernel(%arg0: i32, %arg1: memref<1x8x32xf32, #tpu.memory_space<vmem>>, %arg2: memref<4x32x8xf32, #tpu.memory_space<vmem>>, %arg3: memref<4x32x8xf32, #tpu.memory_space<vmem>>, %arg4: memref<4x32x8xf32, #tpu.memory_space<vmem>>, %arg5: memref<4x1x8xf32, #tpu.memory_space<vmem>>, %arg6: memref<4x1x8xf32, #tpu.memory_space<vmem>>, %arg7: memref<4x1x8xf32, #tpu.memory_space<vmem>>, %arg8: memref<32x30xf32, #tpu.memory_space<vmem>>, %arg9: memref<4x30x8xf32, #tpu.memory_space<vmem>>, %arg10: memref<32x30xf32, #tpu.memory_space<vmem>>, %arg11: memref<4x30x8xf32, #tpu.memory_space<vmem>>, %arg12: memref<4x8x32xf32, #tpu.memory_space<vmem>>, %arg13: memref<1x32xf32, #tpu.memory_space<vmem>>, %arg14: memref<1x8x32xf32, #tpu.memory_space<vmem>>) attributes {dimension_semantics = [#tpu.dimension_semantics<parallel>], iteration_bounds = array<i64: 2>, scalar_prefetch = 0 : i64, scratch_operands = 0 : i64, tpu.core_type = #tpu.core_type<tc>, window_params = [{transform_indices = @transform_0, window_bounds = array<i64: 1, 8, 32>}, {pipeline_mode = #tpu.pipeline_mode<synchronous>, transform_indices = @transform_1, window_bounds = array<i64: 4, 32, 8>}, {pipeline_mode = #tpu.pipeline_mode<synchronous>, transform_indices = @transform_2, window_bounds = array<i64: 4, 32, 8>}, {pipeline_mode = #tpu.pipeline_mode<synchronous>, transform_indices = @transform_3, window_bounds = array<i64: 4, 32, 8>}, {pipeline_mode = #tpu.pipeline_mode<synchronous>, transform_indices = @transform_4, window_bounds = array<i64: 4, 1, 8>}, {pipeline_mode = #tpu.pipeline_mode<synchronous>, transform_indices = @transform_5, window_bounds = array<i64: 4, 1, 8>}, {pipeline_mode = #tpu.pipeline_mode<synchronous>, transform_indices = @transform_6, window_bounds = array<i64: 4, 1, 8>}, {pipeline_mode = #tpu.pipeline_mode<synchronous>, transform_indices = @transform_7, window_bounds = array<i64: 32, 30>}, {pipeline_mode = #tpu.pipeline_mode<synchronous>, transform_indices = @transform_8, window_bounds = array<i64: 4, 30, 8>}, {pipeline_mode = #tpu.pipeline_mode<synchronous>, transform_indices = @transform_9, window_bounds = array<i64: 32, 30>}, {pipeline_mode = #tpu.pipeline_mode<synchronous>, transform_indices = @transform_10, window_bounds = array<i64: 4, 30, 8>}, {pipeline_mode = #tpu.pipeline_mode<synchronous>, transform_indices = @transform_11, window_bounds = array<i64: 4, 8, 32>}, {pipeline_mode = #tpu.pipeline_mode<synchronous>, transform_indices = @transform_12, window_bounds = array<i64: 1, 32>}, {transform_indices = @transform_13, window_bounds = array<i64: 1, 8, 32>}]} {
    %c0 = arith.constant 0 : index
    %c0_0 = arith.constant 0 : index
    %c0_1 = arith.constant 0 : index
    %0 = vector.load %arg1[%c0, %c0_0, %c0_1] : memref<1x8x32xf32, #tpu.memory_space<vmem>>, vector<1x8x32xf32>
    %1 = vector.shape_cast %0 : vector<1x8x32xf32> to vector<8x32xf32>
    %2 = vector.shape_cast %1 : vector<8x32xf32> to vector<1x8x32xf32>
    %3 = vector.broadcast %2 : vector<1x8x32xf32> to vector<4x8x32xf32>
    %c0_2 = arith.constant 0 : index
    %c0_3 = arith.constant 0 : index
    %c0_4 = arith.constant 0 : index
    %4 = vector.load %arg2[%c0_2, %c0_3, %c0_4] : memref<4x32x8xf32, #tpu.memory_space<vmem>>, vector<4x32x8xf32>
    "tpu.trace_start"() <{level = 10 : i32, message = "hnc,hcd->hnd"}> : () -> ()
    %cst = arith.constant dense<0.000000e+00> : vector<4x8x8xf32>
    %5 = tpu.matmul %3, %4, %cst {dimension_numbers = #tpu.dot_dimension_numbers<[2], [1], [1], [2], [0, 0, 0, 1, 1, 2], [0], [0]>} : vector<4x8x32xf32>, vector<4x32x8xf32>, vector<4x8x8xf32> -> vector<4x8x8xf32>
    "tpu.trace_stop"() : () -> ()
    %c0_5 = arith.constant 0 : index
    %c0_6 = arith.constant 0 : index
    %c0_7 = arith.constant 0 : index
    %6 = vector.load %arg5[%c0_5, %c0_6, %c0_7] : memref<4x1x8xf32, #tpu.memory_space<vmem>>, vector<4x1x8xf32>
    %7 = vector.broadcast %6 : vector<4x1x8xf32> to vector<4x8x8xf32>
    %8 = arith.addf %5, %7 : vector<4x8x8xf32>
    %c0_8 = arith.constant 0 : index
    %c0_9 = arith.constant 0 : index
    %c0_10 = arith.constant 0 : index
    %9 = vector.load %arg3[%c0_8, %c0_9, %c0_10] : memref<4x32x8xf32, #tpu.memory_space<vmem>>, vector<4x32x8xf32>
    "tpu.trace_start"() <{level = 10 : i32, message = "hnc,hcd->hnd"}> : () -> ()
    %cst_11 = arith.constant dense<0.000000e+00> : vector<4x8x8xf32>
    %10 = tpu.matmul %3, %9, %cst_11 {dimension_numbers = #tpu.dot_dimension_numbers<[2], [1], [1], [2], [0, 0, 0, 1, 1, 2], [0], [0]>} : vector<4x8x32xf32>, vector<4x32x8xf32>, vector<4x8x8xf32> -> vector<4x8x8xf32>
    "tpu.trace_stop"() : () -> ()
    %c0_12 = arith.constant 0 : index
    %c0_13 = arith.constant 0 : index
    %c0_14 = arith.constant 0 : index
    %11 = vector.load %arg6[%c0_12, %c0_13, %c0_14] : memref<4x1x8xf32, #tpu.memory_space<vmem>>, vector<4x1x8xf32>
    %12 = vector.broadcast %11 : vector<4x1x8xf32> to vector<4x8x8xf32>
    %13 = arith.addf %10, %12 : vector<4x8x8xf32>
    %c0_15 = arith.constant 0 : index
    %c0_16 = arith.constant 0 : index
    %c0_17 = arith.constant 0 : index
    %14 = vector.load %arg4[%c0_15, %c0_16, %c0_17] : memref<4x32x8xf32, #tpu.memory_space<vmem>>, vector<4x32x8xf32>
    "tpu.trace_start"() <{level = 10 : i32, message = "hnc,hcd->hnd"}> : () -> ()
    %cst_18 = arith.constant dense<0.000000e+00> : vector<4x8x8xf32>
    %15 = tpu.matmul %3, %14, %cst_18 {dimension_numbers = #tpu.dot_dimension_numbers<[2], [1], [1], [2], [0, 0, 0, 1, 1, 2], [0], [0]>} : vector<4x8x32xf32>, vector<4x32x8xf32>, vector<4x8x8xf32> -> vector<4x8x8xf32>
    "tpu.trace_stop"() : () -> ()
    %c0_19 = arith.constant 0 : index
    %c0_20 = arith.constant 0 : index
    %c0_21 = arith.constant 0 : index
    %16 = vector.load %arg7[%c0_19, %c0_20, %c0_21] : memref<4x1x8xf32, #tpu.memory_space<vmem>>, vector<4x1x8xf32>
    %17 = vector.broadcast %16 : vector<4x1x8xf32> to vector<4x8x8xf32>
    %18 = arith.addf %15, %17 : vector<4x8x8xf32>
    %c0_22 = arith.constant 0 : index
    %c0_23 = arith.constant 0 : index
    %19 = vector.load %arg8[%c0_22, %c0_23] : memref<32x30xf32, #tpu.memory_space<vmem>>, vector<32x30xf32>
    %cst_24 = arith.constant dense<0.000000e+00> : vector<8x30xf32>
    %20 = tpu.matmul %1, %19, %cst_24 {dimension_numbers = #tpu.dot_dimension_numbers<[1], [0], [0], [1], [0, 0, 1, 1], [], []>} : vector<8x32xf32>, vector<32x30xf32>, vector<8x30xf32> -> vector<8x30xf32>
    %c0_25 = arith.constant 0 : index
    %c0_26 = arith.constant 0 : index
    %21 = vector.load %arg10[%c0_25, %c0_26] : memref<32x30xf32, #tpu.memory_space<vmem>>, vector<32x30xf32>
    %cst_27 = arith.constant dense<0.000000e+00> : vector<8x30xf32>
    %22 = tpu.matmul %1, %21, %cst_27 {dimension_numbers = #tpu.dot_dimension_numbers<[1], [0], [0], [1], [0, 0, 1, 1], [], []>} : vector<8x32xf32>, vector<32x30xf32>, vector<8x30xf32> -> vector<8x30xf32>
    %23 = vector.shape_cast %20 : vector<8x30xf32> to vector<1x8x30xf32>
    %24 = vector.broadcast %23 : vector<1x8x30xf32> to vector<4x8x30xf32>
    %c0_28 = arith.constant 0 : index
    %c0_29 = arith.constant 0 : index
    %c0_30 = arith.constant 0 : index
    %25 = vector.load %arg9[%c0_28, %c0_29, %c0_30] : memref<4x30x8xf32, #tpu.memory_space<vmem>>, vector<4x30x8xf32>
    "tpu.trace_start"() <{level = 10 : i32, message = "hnr,hrd->hnd"}> : () -> ()
    %cst_31 = arith.constant dense<0.000000e+00> : vector<4x8x8xf32>
    %26 = tpu.matmul %24, %25, %cst_31 {dimension_numbers = #tpu.dot_dimension_numbers<[2], [1], [1], [2], [0, 0, 0, 1, 1, 2], [0], [0]>} : vector<4x8x30xf32>, vector<4x30x8xf32>, vector<4x8x8xf32> -> vector<4x8x8xf32>
    "tpu.trace_stop"() : () -> ()
    %27 = arith.addf %13, %26 : vector<4x8x8xf32>
    %28 = vector.shape_cast %22 : vector<8x30xf32> to vector<1x8x30xf32>
    %29 = vector.broadcast %28 : vector<1x8x30xf32> to vector<4x8x30xf32>
    %c0_32 = arith.constant 0 : index
    %c0_33 = arith.constant 0 : index
    %c0_34 = arith.constant 0 : index
    %30 = vector.load %arg11[%c0_32, %c0_33, %c0_34] : memref<4x30x8xf32, #tpu.memory_space<vmem>>, vector<4x30x8xf32>
    "tpu.trace_start"() <{level = 10 : i32, message = "hnr,hrd->hnd"}> : () -> ()
    %cst_35 = arith.constant dense<0.000000e+00> : vector<4x8x8xf32>
    %31 = tpu.matmul %29, %30, %cst_35 {dimension_numbers = #tpu.dot_dimension_numbers<[2], [1], [1], [2], [0, 0, 0, 1, 1, 2], [0], [0]>} : vector<4x8x30xf32>, vector<4x30x8xf32>, vector<4x8x8xf32> -> vector<4x8x8xf32>
    "tpu.trace_stop"() : () -> ()
    %32 = arith.addf %18, %31 : vector<4x8x8xf32>
    %cst_36 = arith.constant 0.353553385 : f32
    %33 = vector.broadcast %cst_36 : f32 to vector<4x8x8xf32>
    %34 = arith.mulf %8, %33 : vector<4x8x8xf32>
    "tpu.trace_start"() <{level = 10 : i32, message = "hnd,hmd->hnm"}> : () -> ()
    %cst_37 = arith.constant dense<0.000000e+00> : vector<4x8x8xf32>
    %35 = tpu.matmul %34, %27, %cst_37 {dimension_numbers = #tpu.dot_dimension_numbers<[2], [2], [1], [1], [0, 0, 0, 1, 1, 1], [0], [0]>} : vector<4x8x8xf32>, vector<4x8x8xf32>, vector<4x8x8xf32> -> vector<4x8x8xf32>
    "tpu.trace_stop"() : () -> ()
    %cst_38 = arith.constant dense<0xFF800000> : vector<4x8xf32>
    %36 = vector.multi_reduction <maximumf>, %35, %cst_38 [2] : vector<4x8x8xf32> to vector<4x8xf32>
    %37 = vector.shape_cast %36 : vector<4x8xf32> to vector<4x8x1xf32>
    %38 = vector.broadcast %37 : vector<4x8x1xf32> to vector<4x8x8xf32>
    %39 = arith.subf %35, %38 : vector<4x8x8xf32>
    %40 = math.exp %39 : vector<4x8x8xf32>
    %cst_39 = arith.constant dense<0.000000e+00> : vector<4x8xf32>
    %41 = vector.multi_reduction <add>, %40, %cst_39 [2] : vector<4x8x8xf32> to vector<4x8xf32>
    %42 = vector.shape_cast %41 : vector<4x8xf32> to vector<4x8x1xf32>
    %43 = tpu.reciprocal %42 : vector<4x8x1xf32> -> vector<4x8x1xf32>
    %44 = vector.broadcast %43 : vector<4x8x1xf32> to vector<4x8x8xf32>
    %45 = arith.mulf %40, %44 : vector<4x8x8xf32>
    "tpu.trace_start"() <{level = 10 : i32, message = "hnm,hmd->hnd"}> : () -> ()
    %cst_40 = arith.constant dense<0.000000e+00> : vector<4x8x8xf32>
    %46 = tpu.matmul %45, %32, %cst_40 {dimension_numbers = #tpu.dot_dimension_numbers<[2], [1], [1], [2], [0, 0, 0, 1, 1, 2], [0], [0]>} : vector<4x8x8xf32>, vector<4x8x8xf32>, vector<4x8x8xf32> -> vector<4x8x8xf32>
    "tpu.trace_stop"() : () -> ()
    %c0_41 = arith.constant 0 : index
    %c0_42 = arith.constant 0 : index
    %c0_43 = arith.constant 0 : index
    %47 = vector.load %arg12[%c0_41, %c0_42, %c0_43] : memref<4x8x32xf32, #tpu.memory_space<vmem>>, vector<4x8x32xf32>
    "tpu.trace_start"() <{level = 10 : i32, message = "hnd,hdc->hnc"}> : () -> ()
    %cst_44 = arith.constant dense<0.000000e+00> : vector<4x8x32xf32>
    %48 = tpu.matmul %46, %47, %cst_44 {dimension_numbers = #tpu.dot_dimension_numbers<[2], [1], [1], [2], [0, 0, 0, 1, 1, 2], [0], [0]>} : vector<4x8x8xf32>, vector<4x8x32xf32>, vector<4x8x32xf32> -> vector<4x8x32xf32>
    "tpu.trace_stop"() : () -> ()
    %c0_45 = arith.constant 0 : index
    %c0_46 = arith.constant 0 : index
    %49 = vector.load %arg13[%c0_45, %c0_46] : memref<1x32xf32, #tpu.memory_space<vmem>>, vector<1x32xf32>
    %50 = vector.extract_strided_slice %48 {offsets = [0, 0, 0], sizes = [1, 8, 32], strides = [1, 1, 1]} : vector<4x8x32xf32> to vector<1x8x32xf32>
    %51 = vector.shape_cast %50 : vector<1x8x32xf32> to vector<8x32xf32>
    %52 = vector.broadcast %49 : vector<1x32xf32> to vector<8x32xf32>
    %53 = arith.addf %52, %51 : vector<8x32xf32>
    %54 = vector.extract_strided_slice %48 {offsets = [1, 0, 0], sizes = [1, 8, 32], strides = [1, 1, 1]} : vector<4x8x32xf32> to vector<1x8x32xf32>
    %55 = vector.shape_cast %54 : vector<1x8x32xf32> to vector<8x32xf32>
    %56 = arith.addf %53, %55 : vector<8x32xf32>
    %57 = vector.extract_strided_slice %48 {offsets = [2, 0, 0], sizes = [1, 8, 32], strides = [1, 1, 1]} : vector<4x8x32xf32> to vector<1x8x32xf32>
    %58 = vector.shape_cast %57 : vector<1x8x32xf32> to vector<8x32xf32>
    %59 = arith.addf %56, %58 : vector<8x32xf32>
    %60 = vector.extract_strided_slice %48 {offsets = [3, 0, 0], sizes = [1, 8, 32], strides = [1, 1, 1]} : vector<4x8x32xf32> to vector<1x8x32xf32>
    %61 = vector.shape_cast %60 : vector<1x8x32xf32> to vector<8x32xf32>
    %62 = arith.addf %59, %61 : vector<8x32xf32>
    %c0_47 = arith.constant 0 : index
    %c0_48 = arith.constant 0 : index
    %c0_49 = arith.constant 0 : index
    %63 = vector.load %arg14[%c0_47, %c0_48, %c0_49] : memref<1x8x32xf32, #tpu.memory_space<vmem>>, vector<1x8x32xf32>
    %64 = vector.shape_cast %63 : vector<1x8x32xf32> to vector<8x32xf32>
    %65 = vector.shape_cast %62 : vector<8x32xf32> to vector<1x8x32xf32>
    tpu.vector_store %arg14[%c0_47, %c0_48, %c0_49], %65 {strides = array<i32>} : memref<1x8x32xf32, #tpu.memory_space<vmem>>, vector<1x8x32xf32>,
    return
  }
  func.func @transform_0(%arg0: i32) -> (i32, i32, i32) {
    %c0_i32 = arith.constant 0 : i32
    %c0_i32_0 = arith.constant 0 : i32
    %c0_i32_1 = arith.constant 0 : i32
    return %arg0, %c0_i32, %c0_i32_0 : i32, i32, i32
  }
  func.func @transform_1(%arg0: i32) -> (i32, i32, i32) {
    %c0_i32 = arith.constant 0 : i32
    %c0_i32_0 = arith.constant 0 : i32
    %c0_i32_1 = arith.constant 0 : i32
    %c0_i32_2 = arith.constant 0 : i32
    return %c0_i32, %c0_i32_0, %c0_i32_1 : i32, i32, i32
  }
  func.func @transform_2(%arg0: i32) -> (i32, i32, i32) {
    %c0_i32 = arith.constant 0 : i32
    %c0_i32_0 = arith.constant 0 : i32
    %c0_i32_1 = arith.constant 0 : i32
    %c0_i32_2 = arith.constant 0 : i32
    return %c0_i32, %c0_i32_0, %c0_i32_1 : i32, i32, i32
  }
  func.func @transform_3(%arg0: i32) -> (i32, i32, i32) {
    %c0_i32 = arith.constant 0 : i32
    %c0_i32_0 = arith.constant 0 : i32
    %c0_i32_1 = arith.constant 0 : i32
    %c0_i32_2 = arith.constant 0 : i32
    return %c0_i32, %c0_i32_0, %c0_i32_1 : i32, i32, i32
  }
  func.func @transform_4(%arg0: i32) -> (i32, i32, i32) {
    %c0_i32 = arith.constant 0 : i32
    %c0_i32_0 = arith.constant 0 : i32
    %c0_i32_1 = arith.constant 0 : i32
    %c0_i32_2 = arith.constant 0 : i32
    return %c0_i32, %c0_i32_0, %c0_i32_1 : i32, i32, i32
  }
  func.func @transform_5(%arg0: i32) -> (i32, i32, i32) {
    %c0_i32 = arith.constant 0 : i32
    %c0_i32_0 = arith.constant 0 : i32
    %c0_i32_1 = arith.constant 0 : i32
    %c0_i32_2 = arith.constant 0 : i32
    return %c0_i32, %c0_i32_0, %c0_i32_1 : i32, i32, i32
  }
  func.func @transform_6(%arg0: i32) -> (i32, i32, i32) {
    %c0_i32 = arith.constant 0 : i32
    %c0_i32_0 = arith.constant 0 : i32
    %c0_i32_1 = arith.constant 0 : i32
    %c0_i32_2 = arith.constant 0 : i32
    return %c0_i32, %c0_i32_0, %c0_i32_1 : i32, i32, i32
  }
  func.func @transform_7(%arg0: i32) -> (i32, i32) {
    %c0_i32 = arith.constant 0 : i32
    %c0_i32_0 = arith.constant 0 : i32
    %c0_i32_1 = arith.constant 0 : i32
    return %c0_i32, %c0_i32_0 : i32, i32
  }
  func.func @transform_8(%arg0: i32) -> (i32, i32, i32) {
    %c0_i32 = arith.constant 0 : i32
    %c0_i32_0 = arith.constant 0 : i32
    %c0_i32_1 = arith.constant 0 : i32
    %c0_i32_2 = arith.constant 0 : i32
    return %c0_i32, %c0_i32_0, %c0_i32_1 : i32, i32, i32
  }
  func.func @transform_9(%arg0: i32) -> (i32, i32) {
    %c0_i32 = arith.constant 0 : i32
    %c0_i32_0 = arith.constant 0 : i32
    %c0_i32_1 = arith.constant 0 : i32
    return %c0_i32, %c0_i32_0 : i32, i32
  }
  func.func @transform_10(%arg0: i32) -> (i32, i32, i32) {
    %c0_i32 = arith.constant 0 : i32
    %c0_i32_0 = arith.constant 0 : i32
    %c0_i32_1 = arith.constant 0 : i32
    %c0_i32_2 = arith.constant 0 : i32
    return %c0_i32, %c0_i32_0, %c0_i32_1 : i32, i32, i32
  }
  func.func @transform_11(%arg0: i32) -> (i32, i32, i32) {
    %c0_i32 = arith.constant 0 : i32
    %c0_i32_0 = arith.constant 0 : i32
    %c0_i32_1 = arith.constant 0 : i32
    %c0_i32_2 = arith.constant 0 : i32
    return %c0_i32, %c0_i32_0, %c0_i32_1 : i32, i32, i32
  }
  func.func @transform_12(%arg0: i32) -> (i32, i32) {
    %c0_i32 = arith.constant 0 : i32
    %c0_i32_0 = arith.constant 0 : i32
    %c0_i32_1 = arith.constant 0 : i32
    return %c0_i32, %c0_i32_0 : i32, i32
  }
  func.func @transform_13(%arg0: i32) -> (i32, i32, i32) {
    %c0_i32 = arith.constant 0 : i32
    %c0_i32_0 = arith.constant 0 : i32
    %c0_i32_1 = arith.constant 0 : i32
    return %arg0, %c0_i32, %c0_i32_0 : i32, i32, i32
  }
}

</mosaic_0001>

<bundles_post_ra>
// kernel: tpu_custom_call.1
= control target key start
LH: loop header
LB: loop body
LE: loop exit
PB: predicated region body
PF: predicated region fallthrough
CT: control target
= control target key end

     0   :  { %18 = vsyncpa [#allocation3], 0  ;;  %s2269_s0 = inlined_call_operand.vmem [shape: f32[2,8,32], index: 0, kind: input, shape index: {}]   ;;  %s2270_s1 = inlined_call_operand.vmem [shape: f32[4,32,8], index: 1, kind: input, shape index: {}]   ;;  %s2271_s2 = inlined_call_operand.vmem [shape: f32[4,32,8], index: 2, kind: input, shape index: {}]   ;;  %s2272_s3 = inlined_call_operand.vmem [shape: f32[4,32,8], index: 3, kind: input, shape index: {}]   ;;  %s2273_s4 = inlined_call_operand.vmem [shape: f32[4,1,8], index: 4, kind: input, shape index: {}]   ;;  %s2274_s5 = inlined_call_operand.vmem [shape: f32[4,1,8], index: 5, kind: input, shape index: {}]   ;;  %s2275_s6 = inlined_call_operand.vmem [shape: f32[4,1,8], index: 6, kind: input, shape index: {}]   ;;  %s2276_s7 = inlined_call_operand.vmem [shape: f32[32,30], index: 7, kind: input, shape index: {}]   ;;  %s2277_s8 = inlined_call_operand.vmem [shape: f32[4,30,8], index: 8, kind: input, shape index: {}]   ;;  %s2278_s9 = inlined_call_operand.vmem [shape: f32[32,30], index: 9, kind: input, shape index: {}]   ;;  %s2279_s10 = inlined_call_operand.vmem [shape: f32[4,30,8], index: 10, kind: input, shape index: {}]   ;;  %s2280_s11 = inlined_call_operand.vmem [shape: f32[4,8,32], index: 11, kind: input, shape index: {}]   ;;  %s2281_s12 = inlined_call_operand.vmem [shape: f32[1,32], index: 12, kind: input, shape index: {}]   ;;  %s2282_s13 = inlined_call_operand.hbm [shape: f32[2,8,32], index: 13, kind: output, shape index: {}]  }
   0x1   :  { %20 = vsyncpa [#allocation3 + $0x1], 0  ;;  %s1792_s25 = smov 0   ;;  %s1794_s26 = smov 0  }
   0x2   :  { %s1796_s27 = smov 0   ;;  %s1798_s28 = smov 0  }
   0x3 LB: > { %2287 = sst [smem:[#allocation5_spill]] %s1716_s27  ;;  %s1813_s29 = sadd.s32 4294967295, %s1720_s28   ;;  %s1720_s28 = sphi %s1798_s28, %s2294_s28   ;;  %s1716_s27 = sphi %s1796_s27, %s2296_s27   ;;  %s1712_s26 = sphi %s1794_s26, %s2298_s26   ;;  %s1708_s25 = sphi %s1792_s25, %s2297_s25  }
   0x4   : > { %s1534_s30 = sadd.s32 4294967294, %s1720_s28   ;;  %s1817_s14 = sadd.s32 1, %s1720_s28  }
   0x5   : > { %2288 = sst [smem:[#allocation6_spill]] %s1817_s14  ;;  %s311_s15 = sadd.s32 1, %s1716_s27 }
   0x6   : > { %s308_s16 = ssub.s32 %s1720_s28, %s1817_s14  ;;  %p321_p0 = scmp.ne.s32.totalorder %s1716_s27, %s1712_s26 }
   0x7   : > { %p309_p1 = scmp.eq.s32.totalorder %s308_s16, 0  ;;  %p322_p2 = scmp.eq.s32.totalorder %s1813_s29, 1 }
   0x8   : > { %p327_p3 = scmp.ne.s32.totalorder %s1712_s26, %s1708_s25  ;;  %p328_p4 = scmp.eq.s32.totalorder %s1534_s30, 1 }
   0x9   : > { %s1828_s17 = scalar_select %p309_p1, %s1716_s27, %s311_s15  }
   0xa   : > { %p1830_p5 = por %p322_p2, %p321_p0  ;;  %p1834_p6 = por %p328_p4, %p327_p3 }
   0xb   : > { %2289 = sst [smem:[#allocation7_spill]] %s1828_s17  ;;  %p1537_p7 = scmp.ge.s32.totalorder %s1720_s28, 1 }
   0xc   : > { %s2291_s19 = scalar_select %p1834_p6, 1, 0 }
   0xd   : > { %p389_p8 = scmp.lt.s32.totalorder %s1720_s28, 3 }
   0xe   : > { %2292 = sst [smem:[#allocation8_spill]] %s2291_s19 }
   0xf   : > { %p390_p9 = pnand %p1537_p7, %p389_p8 }
  0x10   : > { %p432_p10 = scmp.lt.s32.totalorder (!%p390_p9), %s1813_s29, 1  ;;  %s429_s27 = sand.u32 (!%p390_p9), 1, %s1712_s26  }
  0x11   : > { %393 = sbr.rel (%p390_p9) target bundleno = 995 (0x3e3), region = 72  ;;  %s1587_s22 = sshll.u32 (!%p390_p9), %s1813_s29, 3 }
  0x16   : > { %v440_v0 = vld [vmem:[%s2270_s1 + $0x18] sm:$0xff]  ;;  %v439_v1 = vld [vmem:[%s2270_s1 + $0x10] sm:$0xff]  ;;  %v438_v3 = vld [vmem:[%s2270_s1 + $0x8] sm:$0xff]  ;;  %s433_s17 = scalar_select %p432_p10, %s1813_s29, 1  ;;  %vm469_vm0 = vcmask 261120   ;;  %vm845_vm1 = vcmask 1045504  }
  0x17   : > { %485 = vmatpush.msra.mxu0 %v440_v0  ;;  %v444_v2 = vld [vmem:[%s2270_s1 + $0x38] sm:$0xff]  ;;  %v443_v4 = vld [vmem:[%s2270_s1 + $0x30] sm:$0xff]  ;;  %v442_v5 = vld [vmem:[%s2270_s1 + $0x28] sm:$0xff]  ;;  %vm841_vm2 = vcmask 244736   ;;  %vm1061_vm3 = vcmask 64512   ;;  %s1460_s29 = scalar_lea.sflag [#allocation3], %s429_s27 }
  0x18   : > { %505 = vmatpush.msra.mxu1 %v444_v2  ;;  %v437_v6 = vld [vmem:[%s2270_s1] sm:$0xff]  ;;  %s1539_s24 = sshll.u32 %s433_s17, 3  ;;  %v556_v9 = vld [vmem:[%s2271_s2 + $0x18] sm:$0xff]  ;;  %v555_v11 = vld [vmem:[%s2271_s2 + $0x10] sm:$0xff]  ;;  %s1538_s17 = sshll.u32 %s429_s27, 3 }
  0x19   : > { %486 = vmatpush.msra.mxu0 %v439_v1  ;;  %s435_s16 = scalar_lea.vmem %s2269_s0, %s1539_s24  ;;  %v441_v7 = vld [vmem:[%s2270_s1 + $0x20] sm:$0xff]  ;;  %v560_v10 = vld [vmem:[%s2271_s2 + $0x38] sm:$0xff]  ;;  %v559_v12 = vld [vmem:[%s2271_s2 + $0x30] sm:$0xff]  ;;  %s1470_s24 = scalar_lea.hbm %s2282_s13, %s1587_s22 }
  0x1a   : > { %506 = vmatpush.msra.mxu1 %v443_v4  ;;  %v1869_v8 = vld [vmem:[%s435_s16] sm:$0xff]  ;;  %v554_v13 = vld [vmem:[%s2271_s2 + $0x8] sm:$0xff]  ;;  %v448_v16 = vld [vmem:[%s2270_s1 + $0x58] sm:$0xff]  ;;  %s431_s30 = scalar_lea.vmem [#allocation2], %s1538_s17  ;;  %s1474_s16 = sshll.u32 %s1470_s24, 4  ;;  %s1475_s16 = int_to_ptr.hbm [resolvable:$true] %s1474_s16 }
  0x1b   : > { %487 = vmatpush.msra.mxu0 %v438_v3  ;;  %v553_v14 = vld [vmem:[%s2271_s2] sm:$0xff]  ;;  %v558_v15 = vld [vmem:[%s2271_s2 + $0x28] sm:$0xff]  ;;  %v452_v17 = vld [vmem:[%s2270_s1 + $0x78] sm:$0xff]  ;;  %525 = vmatpush.msra.mxu2 %v448_v16  ;;  %s1472_s15 = sshll.u32 %s431_s30, 4  ;;  %s1672_s20 = sshra.s32 %s1475_s16, 4  ;;  %s1473_s15 = int_to_ptr.vmem [resolvable:$true] %s1472_s15  ;;  %s1673_s20 = int_to_ptr.hbm [resolvable:$true] %s1672_s20 }
  0x1c   : > { %507 = vmatpush.msra.mxu1 %v442_v5  ;;  %v447_v18 = vld [vmem:[%s2270_s1 + $0x50] sm:$0xff]  ;;  %v668_v19 = vld [vmem:[%s2272_s3 + $0x18] sm:$0xff]  ;;  %v557_v20 = vld [vmem:[%s2271_s2 + $0x20] sm:$0xff]  ;;  %545 = vmatpush.msra.mxu3 %v452_v17  ;;  %s1674_s21 = scalar_lea.hbm %s1673_s20, 8  ;;  %s1678_s17 = scalar_lea.hbm %s2282_s13, 16 }
  0x1d   : > { %488 = vmatpush.msra.mxu0 %v437_v6  ;;  %v451_v21 = vld [vmem:[%s2270_s1 + $0x70] sm:$0xff]  ;;  %v672_v22 = vld [vmem:[%s2272_s3 + $0x38] sm:$0xff]  ;;  %v446_v23 = vld [vmem:[%s2270_s1 + $0x48] sm:$0xff]  ;;  %526 = vmatpush.msra.mxu2 %v447_v18  ;;  %p1675_p11 = scmp.ne.s32.totalorder %s1673_s20, %s1674_s21  ;;  %p1679_p0 = scmp.lt.s32.totalorder %s1673_s20, %s2282_s13 }
  0x1e   : > { %1540 = vmatmul.msk.f32.vlgmr.msra.gmra.mxu0 %vm469_vm0, %v1869_v8  ;;  %508 = vmatpush.msra.mxu1 %v441_v7  ;;  %v667_v24 = vld [vmem:[%s2272_s3 + $0x10] sm:$0xff]  ;;  %v450_v25 = vld [vmem:[%s2270_s1 + $0x68] sm:$0xff]  ;;  %v665_v29 = vld [vmem:[%s2272_s3] sm:$0xff]  ;;  %p1680_p1 = scmp.lt.s32.totalorder %s1678_s17, %s1674_s21 }
  0x1f   : > { %597 = vmatpush.msrb.mxu0 %v556_v9  ;;  %1541 = vmatmul.msk.f32.vlgmr.msra.gmra.mxu1 %vm469_vm0, %v1869_v8  ;;  %v671_v26 = vld [vmem:[%s2272_s3 + $0x30] sm:$0xff]  ;;  %v666_v27 = vld [vmem:[%s2272_s3 + $0x8] sm:$0xff]  ;;  %v669_v30 = vld [vmem:[%s2272_s3 + $0x20] sm:$0xff]  ;;  %p1676_p12 = pnand %p1675_p11, %p1830_p5 }
  0x20   : > { %617 = vmatpush.msrb.mxu1 %v560_v10  ;;  %546 = vmatpush.msra.mxu3 %v451_v21  ;;  %v670_v28 = vld [vmem:[%s2272_s3 + $0x28] sm:$0xff]  ;;  %v780_v31 = vld [vmem:[%s2276_s7 + $0x18] sm:$0xff]  ;;  %v779_v33 = vld [vmem:[%s2276_s7 + $0x10] sm:$0xff]  ;;  %p1681_p2 = por %p1680_p1, %p1679_p0 }
  0x21   : > { %598 = vmatpush.msrb.mxu0 %v555_v11  ;;  %527 = vmatpush.msra.mxu2 %v446_v23  ;;  %v804_v32 = vld [vmem:[%s2278_s9 + $0x18] sm:$0xff]  ;;  %v803_v34 = vld [vmem:[%s2278_s9 + $0x10] sm:$0xff]  ;;  %v778_v35 = vld [vmem:[%s2276_s7 + $0x8] sm:$0xff]  ;;  %p1677_p13 = pneg %p1676_p12 }
  0x22   : > { %618 = vmatpush.msrb.mxu1 %v559_v12  ;;  %547 = vmatpush.msra.mxu3 %v450_v25  ;;  %v802_v36 = vld [vmem:[%s2278_s9 + $0x8] sm:$0xff]  ;;  %v777_v37 = vld [vmem:[%s2276_s7] sm:$0xff]  ;;  %v564_v41 = vld [vmem:[%s2271_s2 + $0x58] sm:$0xff] }
  0x23   : > { %599 = vmatpush.msrb.mxu0 %v554_v13  ;;  %v801_v38 = vld [vmem:[%s2278_s9] sm:$0xff]  ;;  %v568_v42 = vld [vmem:[%s2271_s2 + $0x78] sm:$0xff]  ;;  %v563_v43 = vld [vmem:[%s2271_s2 + $0x50] sm:$0xff]  ;;  %p1682_p3 = pnand %p1681_p2, %p1677_p13 }
  0x24   : > { %619 = vmatpush.msrb.mxu1 %v558_v15  ;;  %v445_v39 = vld [vmem:[%s2270_s1 + $0x40] sm:$0xff]  ;;  %v567_v44 = vld [vmem:[%s2271_s2 + $0x70] sm:$0xff]  ;;  %v562_v45 = vld [vmem:[%s2271_s2 + $0x48] sm:$0xff] }
  0x25   : > { %600 = vmatpush.msrb.mxu0 %v553_v14  ;;  %v449_v40 = vld [vmem:[%s2270_s1 + $0x60] sm:$0xff]  ;;  %528 = vmatpush.msra.mxu2 %v445_v39  ;;  %v566_v46 = vld [vmem:[%s2271_s2 + $0x68] sm:$0xff]  ;;  %v676_v49 = vld [vmem:[%s2272_s3 + $0x58] sm:$0xff] }
  0x26   : > { %1544 = vmatmul.msk.f32.vlgmr.msrb.gmra.mxu0 %vm469_vm0, %v1869_v8  ;;  %620 = vmatpush.msrb.mxu1 %v557_v20  ;;  %v561_v47 = vld [vmem:[%s2271_s2 + $0x40] sm:$0xff]  ;;  %v680_v50 = vld [vmem:[%s2272_s3 + $0x78] sm:$0xff]  ;;  %v675_v51 = vld [vmem:[%s2272_s3 + $0x50] sm:$0xff] }
  0x27   : > { %709 = vmatpush.msra.mxu0 %v668_v19  ;;  %1545 = vmatmul.msk.f32.vlgmr.msrb.gmra.mxu1 %vm469_vm0, %v1869_v8  ;;  %v565_v48 = vld [vmem:[%s2271_s2 + $0x60] sm:$0xff]  ;;  %v679_v52 = vld [vmem:[%s2272_s3 + $0x70] sm:$0xff]  ;;  %v674_v53 = vld [vmem:[%s2272_s3 + $0x48] sm:$0xff] }
  0x28   : > { %729 = vmatpush.msra.mxu1 %v672_v22  ;;  %548 = vmatpush.msra.mxu3 %v449_v40  ;;  %v678_v54 = vld [vmem:[%s2272_s3 + $0x68] sm:$0xff]  ;;  %v673_v55 = vld [vmem:[%s2272_s3 + $0x40] sm:$0xff]  ;;  %v828_v57 = vld [vmem:[%s2277_s8 + $0x18] sm:$0x3f] }
  0x29   : > { %710 = vmatpush.msra.mxu0 %v667_v24  ;;  %1542 = vmatmul.msk.f32.vlgmr.msra.gmra.mxu2 %vm469_vm0, %v1869_v8  ;;  %v677_v56 = vld [vmem:[%s2272_s3 + $0x60] sm:$0xff]  ;;  %v832_v58 = vld [vmem:[%s2277_s8 + $0x38] sm:$0x3f]  ;;  %v827_v59 = vld [vmem:[%s2277_s8 + $0x10] sm:$0xff] }
  0x2a   : > { %730 = vmatpush.msra.mxu1 %v671_v26  ;;  %1543 = vmatmul.msk.f32.vlgmr.msra.gmra.mxu3 %vm469_vm0, %v1869_v8  ;;  %v836_v60 = vld [vmem:[%s2277_s8 + $0x58] sm:$0x3f]  ;;  %v831_v62 = vld [vmem:[%s2277_s8 + $0x30] sm:$0xff]  ;;  %v826_v1 = vld [vmem:[%s2277_s8 + $0x8] sm:$0xff] }
  0x2b   : > { %711 = vmatpush.msra.mxu0 %v666_v27  ;;  %637 = vmatpush.msrb.mxu2 %v564_v41  ;;  %v840_v61 = vld [vmem:[%s2277_s8 + $0x78] sm:$0x3f]  ;;  %v835_v63 = vld [vmem:[%s2277_s8 + $0x50] sm:$0xff]  ;;  %v830_v2 = vld [vmem:[%s2277_s8 + $0x28] sm:$0xff] }
  0x2c   : > { %731 = vmatpush.msra.mxu1 %v670_v28  ;;  %657 = vmatpush.msrb.mxu3 %v568_v42  ;;  %v839_v0 = vld [vmem:[%s2277_s8 + $0x70] sm:$0xff]  ;;  %v834_v3 = vld [vmem:[%s2277_s8 + $0x48] sm:$0xff]  ;;  %v825_v5 = vld [vmem:[%s2277_s8] sm:$0xff] }
  0x2d   : > { %712 = vmatpush.msra.mxu0 %v665_v29  ;;  %638 = vmatpush.msrb.mxu2 %v563_v43  ;;  %v838_v4 = vld [vmem:[%s2277_s8 + $0x68] sm:$0xff]  ;;  %v829_v6 = vld [vmem:[%s2277_s8 + $0x20] sm:$0xff]  ;;  %v945_v9 = vld [vmem:[%s2279_s10 + $0x18] sm:$0x3f] }
  0x2e   : > { %1548 = vmatmul.msk.f32.vlgmr.msra.gmra.mxu0 %vm469_vm0, %v1869_v8  ;;  %732 = vmatpush.msra.mxu1 %v669_v30  ;;  %v833_v7 = vld [vmem:[%s2277_s8 + $0x40] sm:$0xff]  ;;  %v949_v10 = vld [vmem:[%s2279_s10 + $0x38] sm:$0x3f]  ;;  %v944_v13 = vld [vmem:[%s2279_s10 + $0x10] sm:$0xff] }
  0x2f   : > { %793 = vmatpush.msrb.mxu0 %v780_v31  ;;  %1549 = vmatmul.msk.f32.vlgmr.msra.gmra.mxu1 %vm469_vm0, %v1869_v8  ;;  %v953_v11 = vld [vmem:[%s2279_s10 + $0x58] sm:$0x3f]  ;;  %v948_v14 = vld [vmem:[%s2279_s10 + $0x30] sm:$0xff]  ;;  %v943_v17 = vld [vmem:[%s2279_s10 + $0x8] sm:$0xff] }
  0x30   : > { %817 = vmatpush.msrb.mxu1 %v804_v32  ;;  %658 = vmatpush.msrb.mxu3 %v567_v44  ;;  %v957_v12 = vld [vmem:[%s2279_s10 + $0x78] sm:$0x3f]  ;;  %v952_v15 = vld [vmem:[%s2279_s10 + $0x50] sm:$0xff]  ;;  %v947_v18 = vld [vmem:[%s2279_s10 + $0x28] sm:$0xff] }
  0x31   : > { %794 = vmatpush.msrb.mxu0 %v779_v33  ;;  %639 = vmatpush.msrb.mxu2 %v562_v45  ;;  %v956_v16 = vld [vmem:[%s2279_s10 + $0x70] sm:$0xff]  ;;  %v951_v19 = vld [vmem:[%s2279_s10 + $0x48] sm:$0xff]  ;;  %v942_v21 = vld [vmem:[%s2279_s10] sm:$0xff] }
  0x32   : > { %818 = vmatpush.msrb.mxu1 %v803_v34  ;;  %659 = vmatpush.msrb.mxu3 %v566_v46  ;;  %v955_v20 = vld [vmem:[%s2279_s10 + $0x68] sm:$0xff]  ;;  %v946_v22 = vld [vmem:[%s2279_s10 + $0x20] sm:$0xff] }
  0x33   : > { %795 = vmatpush.msrb.mxu0 %v778_v35  ;;  %640 = vmatpush.msrb.mxu2 %v561_v47  ;;  %v950_v23 = vld [vmem:[%s2279_s10 + $0x40] sm:$0xff] }
  0x34   : > { %819 = vmatpush.msrb.mxu1 %v802_v36  ;;  %660 = vmatpush.msrb.mxu3 %v565_v48  ;;  %v954_v24 = vld [vmem:[%s2279_s10 + $0x60] sm:$0xff] }
  0x35   : > { %796 = vmatpush.msrb.mxu0 %v777_v37  ;;  %1546 = vmatmul.msk.f32.vlgmr.msrb.gmra.mxu2 %vm469_vm0, %v1869_v8  ;;  %v1638_v37 = vld [vmem:[%s2274_s5 + $0x3] ss:$0 sm:$0xff]  ;;  %v1635_v41 = vld [vmem:[%s2273_s4 + $0x2] ss:$0 sm:$0xff]  ;;  %v1631_v45 = vld [vmem:[%s2274_s5] ss:$0 sm:$0xff] }
  0x36   : > { %1552 = vmatmul.msk.f32.vlgmr.msrb.gmra.mxu0 %vm469_vm0, %v1869_v8  ;;  %820 = vmatpush.msrb.mxu1 %v801_v38  ;;  %v1637_v38 = vld [vmem:[%s2274_s5 + $0x2] ss:$0 sm:$0xff]  ;;  %v1636_v42 = vld [vmem:[%s2273_s4 + $0x3] ss:$0 sm:$0xff]  ;;  %v1632_v46 = vld [vmem:[%s2274_s5 + $0x1] ss:$0 sm:$0xff] }
  0x37   : > { %1553 = vmatmul.msk.f32.vlgmr.msrb.gmra.mxu1 %vm469_vm0, %v1869_v8  ;;  %1547 = vmatmul.msk.f32.vlgmr.msrb.gmra.mxu3 %vm469_vm0, %v1869_v8 }
  0x38   : > { %749 = vmatpush.msra.mxu2 %v676_v49  ;;  %769 = vmatpush.msra.mxu3 %v680_v50 }
  0x39   : > { %1558 = vmatpush.msk.msra.mxu0 %vm845_vm1, %v836_v60  ;;  %1560 = vmatpush.msk.msra.mxu1 %vm845_vm1, %v840_v61 }
  0x3a   : > { %750 = vmatpush.msra.mxu2 %v675_v51  ;;  %770 = vmatpush.msra.mxu3 %v679_v52  ;;  %v1629_v51 = vld [vmem:[%s2273_s4] ss:$0 sm:$0xff]  ;;  %v1640_v52 = vld [vmem:[%s2275_s6 + $0x3] ss:$0 sm:$0xff] }
  0x3b   : > { %908 = vmatpush.msra.mxu0 %v835_v63  ;;  %931 = vmatpush.msra.mxu1 %v839_v0 }
  0x3c   : > { %751 = vmatpush.msra.mxu2 %v674_v53  ;;  %771 = vmatpush.msra.mxu3 %v678_v54 }
  0x3d   : > { %909 = vmatpush.msra.mxu0 %v834_v3  ;;  %932 = vmatpush.msra.mxu1 %v838_v4 }
  0x3e   : > { %752 = vmatpush.msra.mxu2 %v673_v55  ;;  %772 = vmatpush.msra.mxu3 %v677_v56  ;;  %v1630_v55 = vld [vmem:[%s2273_s4 + $0x1] ss:$0 sm:$0xff]  ;;  %v1639_v56 = vld [vmem:[%s2275_s6 + $0x2] ss:$0 sm:$0xff] }
  0x3f   : > { %1550 = vmatmul.msk.f32.vlgmr.msra.gmra.mxu2 %vm469_vm0, %v1869_v8  ;;  %1551 = vmatmul.msk.f32.vlgmr.msra.gmra.mxu3 %vm469_vm0, %v1869_v8  ;;  %v837_v8 = vld [vmem:[%s2277_s8 + $0x60] sm:$0xff] }
  0x40   : > { %1554 = vmatpush.msk.msrb.mxu2 %vm845_vm1, %v828_v57  ;;  %1556 = vmatpush.msk.msrb.mxu3 %vm845_vm1, %v832_v58 }
  0x41   : > { %910 = vmatpush.msra.mxu0 %v833_v7  ;;  %933 = vmatpush.msra.mxu1 %v837_v8 }
  0x42   : > { %862 = vmatpush.msrb.mxu2 %v827_v59  ;;  %885 = vmatpush.msrb.mxu3 %v831_v62 }
  0x43   : > { %1566 = vmatpush.msk.msrb.mxu0 %vm845_vm1, %v953_v11  ;;  %1568 = vmatpush.msk.msrb.mxu1 %vm845_vm1, %v957_v12 }
  0x44   : > { %863 = vmatpush.msrb.mxu2 %v826_v1  ;;  %886 = vmatpush.msrb.mxu3 %v830_v2 }
  0x45   : > { %1023 = vmatpush.msrb.mxu0 %v952_v15  ;;  %1046 = vmatpush.msrb.mxu1 %v956_v16 }
  0x46   : > { %864 = vmatpush.msrb.mxu2 %v825_v5  ;;  %887 = vmatpush.msrb.mxu3 %v829_v6  ;;  %v1633_v5 = vld [vmem:[%s2275_s6] ss:$0 sm:$0xff]  ;;  %v1634_v6 = vld [vmem:[%s2275_s6 + $0x1] ss:$0 sm:$0xff] }
  0x47   : > { %1024 = vmatpush.msrb.mxu0 %v951_v19  ;;  %1047 = vmatpush.msrb.mxu1 %v955_v20 }
  0x48   : > { %1562 = vmatpush.msk.msra.mxu2 %vm845_vm1, %v945_v9  ;;  %1564 = vmatpush.msk.msra.mxu3 %vm845_vm1, %v949_v10 }
  0x49   : > { %1025 = vmatpush.msrb.mxu0 %v950_v23  ;;  %1048 = vmatpush.msrb.mxu1 %v954_v24 }
  0x4a   : > { %977 = vmatpush.msra.mxu2 %v944_v13  ;;  %1000 = vmatpush.msra.mxu3 %v948_v14 }
  0x4c   : > { %978 = vmatpush.msra.mxu2 %v943_v17  ;;  %1001 = vmatpush.msra.mxu3 %v947_v18 }
  0x4e   : > { %979 = vmatpush.msra.mxu2 %v942_v21  ;;  %1002 = vmatpush.msra.mxu3 %v946_v22 }
  0x9b   : > { %v490_v25 = vpop.f32.mrf.mxu0 }
  0x9c   : > { %v510_v26 = vpop.f32.mrf.mxu1  ;;  %v491_v61 = vadd.f32 %v1629_v51, %v490_v25 }
  0x9d   : > { %v511_v1 = vadd.f32 %v1630_v55, %v510_v26 }
  0x9e   : > { %v1057_v11 = vmul.f32 0.35355338, %v491_v61 }
  0x9f   : > { %v1058_v12 = vmul.f32 0.35355338, %v511_v1 }
  0xa3   : > { %v602_v27 = vpop.f32.mrf.mxu0 }
  0xa4   : > { %v622_v28 = vpop.f32.mrf.mxu1  ;;  %v603_v57 = vadd.f32 %v1631_v45, %v602_v27 }
  0xa5   : > { %v623_v58 = vadd.f32 %v1632_v46, %v622_v28 }
  0xab   : > { %v2147_v29 = vpop.f32.mrf.mxu0 }
  0xac   : > { %v2149_v30 = vpop.f32.mrf.mxu1  ;;  %v530_v33 = vpop.f32.mrf.mxu2  ;;  %v715_v13 = vadd.f32 %v1633_v5, %v2147_v29 }
  0xad   : > { %v550_v34 = vpop.f32.mrf.mxu3  ;;  %v531_v47 = vadd.f32 %v1635_v41, %v530_v33  ;;  %v735_v14 = vadd.f32 %v1634_v6, %v2149_v30 }
  0xae   : > { %v551_v48 = vadd.f32 %v1636_v42, %v550_v34 }
  0xaf   : > { %v1059_v59 = vmul.f32 0.35355338, %v531_v47 }
  0xb0   : > { %v1060_v60 = vmul.f32 0.35355338, %v551_v48 }
  0xb3   : > { %v798_v31 = vpop.f32.mrf.mxu0 }
  0xb4   : > { %1555 = vmatmul.msk.f32.vlgmr.msrb.gmra.mxu2 %vm841_vm2, %v798_v31  ;;  %1557 = vmatmul.msk.f32.vlgmr.msrb.gmra.mxu3 %vm841_vm2, %v798_v31  ;;  %v822_v32 = vpop.f32.mrf.mxu1 }
  0xb5   : > { %1559 = vmatmul.msk.f32.vlgmr.msra.gmra.mxu0 %vm841_vm2, %v798_v31  ;;  %1561 = vmatmul.msk.f32.vlgmr.msra.gmra.mxu1 %vm841_vm2, %v798_v31 }
  0xb8   : > { %v642_v35 = vpop.f32.mrf.mxu2 }
  0xb9   : > { %v643_v44 = vadd.f32 %v1637_v38, %v642_v35 }
  0xba   : > { %v662_v36 = vpop.f32.mrf.mxu3 }
  0xbb   : > { %v663_v43 = vadd.f32 %v1638_v37, %v662_v36 }
  0xbc   : > { %1563 = vmatmul.msk.f32.vlgmr.msra.gmra.mxu2 %vm841_vm2, %v822_v32  ;;  %1565 = vmatmul.msk.f32.vlgmr.msra.gmra.mxu3 %vm841_vm2, %v822_v32 }
  0xbd   : > { %1567 = vmatmul.msk.f32.vlgmr.msrb.gmra.mxu0 %vm841_vm2, %v822_v32  ;;  %1569 = vmatmul.msk.f32.vlgmr.msrb.gmra.mxu1 %vm841_vm2, %v822_v32 }
  0xc2   : > { %v754_v39 = vpop.f32.mrf.mxu2  ;;  %v774_v40 = vpop.f32.mrf.mxu3 }
  0xc3   : > { %v775_v62 = vadd.f32 %v1640_v52, %v774_v40  ;;  %v755_v4 = vadd.f32 %v1639_v56, %v754_v39 }
 0x132   : > { %v912_v49 = vpop.f32.mrf.mxu0  ;;  %v935_v50 = vpop.f32.mrf.mxu1 }
 0x133   : > { %v940_v53 = vadd.f32 %v912_v49, %v643_v44  ;;  %v941_v54 = vadd.f32 %v935_v50, %v663_v43 }
 0x135   : > { %1574 = vmatpush.xpose.msk.msra.mxu0 %vm1061_vm3, %v940_v53  ;;  %1576 = vmatpush.xpose.msk.msra.mxu1 %vm1061_vm3, %v941_v54 }
 0x137   : > { %v866_v63 = vpop.f32.mrf.mxu2  ;;  %v889_v0 = vpop.f32.mrf.mxu3 }
 0x138   : > { %v938_v2 = vadd.f32 %v866_v63, %v603_v57  ;;  %v939_v3 = vadd.f32 %v889_v0, %v623_v58  ;;  %1575 = vmatmul.msk.f32.vlgmr.msra.gmra.mxu0 %vm1061_vm3, %v1059_v59  ;;  %1577 = vmatmul.msk.f32.vlgmr.msra.gmra.mxu1 %vm1061_vm3, %v1060_v60 }
 0x13a   : > { %v1027_v7 = vpop.f32.mrf.mxu0  ;;  %v1050_v8 = vpop.f32.mrf.mxu1  ;;  %1570 = vmatpush.xpose.msk.msrb.mxu2 %vm1061_vm3, %v938_v2  ;;  %1572 = vmatpush.xpose.msk.msrb.mxu3 %vm1061_vm3, %v939_v3 }
 0x13b   : > { %v1055_v9 = vadd.f32 %v1027_v7, %v755_v4  ;;  %v1056_v10 = vadd.f32 %v1050_v8, %v775_v62 }
 0x13d   : > { %1326 = vmatpush.msrb.mxu0 %v1055_v9  ;;  %1349 = vmatpush.msrb.mxu1 %v1056_v10 }
 0x13e   : > { %1571 = vmatmul.msk.f32.vlgmr.msrb.gmra.mxu2 %vm1061_vm3, %v1057_v11  ;;  %1573 = vmatmul.msk.f32.vlgmr.msrb.gmra.mxu3 %vm1061_vm3, %v1058_v12 }
 0x13f   : > { %v981_v15 = vpop.f32.mrf.mxu2  ;;  %v1004_v16 = vpop.f32.mrf.mxu3 }
 0x140   : > { %v1053_v17 = vadd.f32 %v981_v15, %v715_v13  ;;  %v1054_v18 = vadd.f32 %v1004_v16, %v735_v14 }
 0x142   : > { %1280 = vmatpush.msra.mxu2 %v1053_v17  ;;  %1303 = vmatpush.msra.mxu3 %v1054_v18 }
 0x1b5   : > { %v1137_v19 = vpop.f32.mrf.mxu0  ;;  %v1163_v21 = vpop.f32.mrf.mxu1 }
 0x1b6   : > { %v1172_v20 = vsel %vm1061_vm3, %v1137_v19, -inf  ;;  %v1175_v22 = vsel %vm1061_vm3, %v1163_v21, -inf }
 0x1b7   : > { %1173 = vmax.xlane.f32.xlu1 %v1172_v20 }
 0x1bf   : > { %1176 = vmax.xlane.f32.xlu1 %v1175_v22 }
 0x1c1   : > { %v1085_v23 = vpop.f32.mrf.mxu2  ;;  %v1111_v25 = vpop.f32.mrf.mxu3 }
 0x1c2   : > { %v1166_v24 = vsel %vm1061_vm3, %v1085_v23, -inf  ;;  %v1169_v26 = vsel %vm1061_vm3, %v1111_v25, -inf }
 0x1c3   : > { %1167 = vmax.xlane.f32.xlu0 %v1166_v24 }
 0x1cb   : > { %1170 = vmax.xlane.f32.xlu0 %v1169_v26 }
 0x22a   : > { %v1174_v27 = vpop.xlane.xlu1 %1173 }
 0x22b   : > { %v1180_v28 = vsub.f32 %v1137_v19, %v1174_v27 }
 0x22d   : > { %v1186_v29 = vmul.f32 1.442695, %v1180_v28 }
 0x22f   : > { %1642 = vpow2.f32 %v1186_v29 }
 0x232   : > { %v1177_v30 = vpop.xlane.xlu1 %1176 }
 0x233   : > { %v1181_v31 = vsub.f32 %v1163_v21, %v1177_v30 }
 0x235   : > { %v1643_v32 = vpop.eup %1642  ;;  %v1188_v33 = vmul.f32 1.442695, %v1181_v31  ;;  %v1356_v31 = vld [vmem:[%s2280_s11 + $0x10] sm:$0xff] }
 0x236   : > { %v1168_v34 = vpop.xlane.xlu0 %1167  ;;  %v1196_v35 = vsel %vm1061_vm3, %v1643_v32, 0.0  ;;  %1422 = vmatpush.msra.mxu0 %v1356_v31 }
 0x237   : > { %1644 = vpow2.f32 %v1188_v33  ;;  %v1178_v36 = vsub.f32 %v1085_v23, %v1168_v34  ;;  %1197 = vadd.xlane.f32.xlu0 %v1196_v35  ;;  %v1354_v33 = vld [vmem:[%s2280_s11] sm:$0xff]  ;;  %v1355_v34 = vld [vmem:[%s2280_s11 + $0x8] sm:$0xff] }
 0x238   : > { %1376 = vmatpush.msrb.mxu2 %v1354_v33  ;;  %1399 = vmatpush.msrb.mxu3 %v1355_v34 }
 0x239   : > { %v1182_v37 = vmul.f32 1.442695, %v1178_v36 }
 0x23b   : > { %1646 = vpow2.f32 %v1182_v37 }
 0x23d   : > { %v1645_v38 = vpop.eup %1644 }
 0x23e   : > { %v1171_v39 = vpop.xlane.xlu0 %1170  ;;  %v1199_v40 = vsel %vm1061_vm3, %v1645_v38, 0.0 }
 0x23f   : > { %v1179_v41 = vsub.f32 %v1111_v25, %v1171_v39  ;;  %1200 = vadd.xlane.f32.xlu1 %v1199_v40  ;;  %v1641_v39 = vld [vmem:[%s2281_s12] ss:$0 sm:$0xff] }
 0x241   : > { %v2203_v42 = vpop.eup %1646  ;;  %v1184_v43 = vmul.f32 1.442695, %v1179_v41 }
 0x242   : > { %v1190_v44 = vsel %vm1061_vm3, %v2203_v42, 0.0 }
 0x243   : > { %1648 = vpow2.f32 %v1184_v43  ;;  %1191 = vadd.xlane.f32.xlu2 %v1190_v44 }
 0x249   : > { %v2207_v45 = vpop.eup %1648 }
 0x24a   : > { %v1193_v46 = vsel %vm1061_vm3, %v2207_v45, 0.0 }
 0x24b   : > { %1194 = vadd.xlane.f32.xlu2 %v1193_v46 }
 0x2aa   : > { %v1198_v47 = vpop.xlane.xlu0 %1197 }
 0x2ab   : > { %1650 = vrcp.f32 %v1198_v47  ;;  %v1241_v52 = vand.u32 2147483648, %v1198_v47  ;;  %v1239_v54 = vand.u32 2147483647, %v1198_v47  ;;  %vm1235_vm5 = vweird.f32 %v1198_v47 }
 0x2ad   : > { %v1242_v58 = vor.u32 1.1754944e-38, %v1241_v52  ;;  %vm1240_vm7 = vcmp.eq.f32.partialorder %v1239_v54, 8.507059e+37 }
 0x2b1   : > { %v1651_v48 = vpop.eup %1650 }
 0x2b2   : > { %v1231_v49 = vmul.f32 %v1651_v48, %v1198_v47  ;;  %v1201_v50 = vpop.xlane.xlu1 %1200  ;;  %vm1236_vm4 = vweird.f32 %v1651_v48 }
 0x2b3   : > { %1652 = vrcp.f32 %v1201_v50  ;;  %vm1237_vm6 = vmor %vm1235_vm5, %vm1236_vm4  ;;  %v1253_v1 = vand.u32 2147483647, %v1201_v50  ;;  %v1255_v2 = vand.u32 2147483648, %v1201_v50  ;;  %vm1249_vm9 = vweird.f32 %v1201_v50 }
 0x2b4   : > { %v1232_v51 = vsub.f32 1.0, %v1231_v49 }
 0x2b5   : > { %vm1254_vm11 = vcmp.eq.f32.partialorder %v1253_v1, 8.507059e+37  ;;  %v1256_v8 = vor.u32 1.1754944e-38, %v1255_v2 }
 0x2b6   : > { %v1233_v53 = vmul.f32 %v1651_v48, %v1232_v51  ;;  %v1192_v55 = vpop.xlane.xlu2 %1191 }
 0x2b7   : > { %1654 = vrcp.f32 %v1192_v55  ;;  %v1213_v9 = vand.u32 2147483648, %v1192_v55  ;;  %v1211_v12 = vand.u32 2147483647, %v1192_v55  ;;  %vm1207_vm13 = vweird.f32 %v1192_v55 }
 0x2b8   : > { %v1234_v56 = vadd.f32 %v1651_v48, %v1233_v53 }
 0x2b9   : > { %v1653_v57 = vpop.eup %1652  ;;  %v1214_v17 = vor.u32 1.1754944e-38, %v1213_v9  ;;  %vm1212_vm15 = vcmp.eq.f32.partialorder %v1211_v12, 8.507059e+37 }
 0x2ba   : > { %v1238_v59 = vsel %vm1237_vm6, %v1651_v48, %v1234_v56  ;;  %v1245_v60 = vmul.f32 %v1653_v57, %v1201_v50  ;;  %vm1250_vm8 = vweird.f32 %v1653_v57 }
 0x2bb   : > { %v1243_v61 = vsel %vm1240_vm7, %v1242_v58, %v1238_v59  ;;  %vm1251_vm10 = vmor %vm1249_vm9, %vm1250_vm8 }
 0x2bc   : > { %v1260_v62 = vmul.f32 %v1643_v32, %v1243_v61  ;;  %v1246_v63 = vsub.f32 1.0, %v1245_v60  ;;  %v1357_v32 = vld [vmem:[%s2280_s11 + $0x18] sm:$0xff] }
 0x2bd   : > { %v1655_v0 = vpop.eup %1654  ;;  %1445 = vmatpush.msra.mxu1 %v1357_v32 }
 0x2be   : > { %v1247_v3 = vmul.f32 %v1653_v57, %v1246_v63  ;;  %v1203_v4 = vmul.f32 %v1655_v0, %v1192_v55  ;;  %v1195_v5 = vpop.xlane.xlu2 %1194  ;;  %1580 = vmatmul.msk.f32.vlgmr.msrb.gmra.mxu0 %vm1061_vm3, %v1260_v62  ;;  %vm1208_vm12 = vweird.f32 %v1655_v0 }
 0x2bf   : > { %1656 = vrcp.f32 %v1195_v5  ;;  %vm1209_vm14 = vmor %vm1207_vm13, %vm1208_vm12  ;;  %v1227_v23 = vand.u32 2147483648, %v1195_v5  ;;  %v1225_v25 = vand.u32 2147483647, %v1195_v5  ;;  %vm1221_vm2 = vweird.f32 %v1195_v5 }
 0x2c0   : > { %v1248_v6 = vadd.f32 %v1653_v57, %v1247_v3  ;;  %v1204_v7 = vsub.f32 1.0, %v1203_v4 }
 0x2c1   : > { %v1228_v27 = vor.u32 1.1754944e-38, %v1227_v23  ;;  %vm1226_vm5 = vcmp.eq.f32.partialorder %v1225_v25, 8.507059e+37 }
 0x2c2   : > { %v1252_v10 = vsel %vm1251_vm10, %v1653_v57, %v1248_v6  ;;  %v1205_v11 = vmul.f32 %v1655_v0, %v1204_v7 }
 0x2c3   : > { %v1257_v13 = vsel %vm1254_vm11, %v1256_v8, %v1252_v10 }
 0x2c4   : > { %v1261_v14 = vmul.f32 %v1645_v38, %v1257_v13  ;;  %v1206_v15 = vadd.f32 %v1655_v0, %v1205_v11 }
 0x2c5   : > { %v1657_v16 = vpop.eup %1656 }
 0x2c6   : > { %v1210_v18 = vsel %vm1209_vm14, %v1655_v0, %v1206_v15  ;;  %v1217_v19 = vmul.f32 %v1657_v16, %v1195_v5  ;;  %1581 = vmatmul.msk.f32.vlgmr.msrb.gmra.mxu1 %vm1061_vm3, %v1261_v14  ;;  %vm1222_vm1 = vweird.f32 %v1657_v16 }
 0x2c7   : > { %v1215_v20 = vsel %vm1212_vm15, %v1214_v17, %v1210_v18  ;;  %vm1223_vm4 = vmor %vm1221_vm2, %vm1222_vm1 }
 0x2c8   : > { %v1218_v21 = vsub.f32 1.0, %v1217_v19  ;;  %v1258_v22 = vmul.f32 %v2203_v42, %v1215_v20 }
 0x2ca   : > { %v1219_v24 = vmul.f32 %v1657_v16, %v1218_v21  ;;  %1578 = vmatmul.msk.f32.vlgmr.msra.gmra.mxu2 %vm1061_vm3, %v1258_v22 }
 0x2cc   : > { %v1220_v26 = vadd.f32 %v1657_v16, %v1219_v24 }
 0x2ce   : > { %v1224_v28 = vsel %vm1223_vm4, %v1657_v16, %v1220_v26 }
 0x2cf   : > { %v1229_v29 = vsel %vm1226_vm5, %v1228_v27, %v1224_v28 }
 0x2d0   : > { %v1259_v30 = vmul.f32 %v2207_v45, %v1229_v29 }
 0x2d2   : > { %1579 = vmatmul.msk.f32.vlgmr.msra.gmra.mxu3 %vm1061_vm3, %v1259_v30 }
 0x33b   : > { %v1328_v35 = vpop.f32.mrf.mxu0 }
 0x33c   : > { %1584 = vmatmul.msk.f32.vlgmr.msra.gmra.mxu0 %vm1061_vm3, %v1328_v35 }
 0x343   : > { %v1351_v36 = vpop.f32.mrf.mxu1 }
 0x344   : > { %1585 = vmatmul.msk.f32.vlgmr.msra.gmra.mxu1 %vm1061_vm3, %v1351_v36 }
 0x34d   : > { %v1282_v37 = vpop.f32.mrf.mxu2 }
 0x34e   : > { %1582 = vmatmul.msk.f32.vlgmr.msrb.gmra.mxu2 %vm1061_vm3, %v1282_v37 }
 0x355   : > { %v1305_v38 = vpop.f32.mrf.mxu3 }
 0x356   : > { %1583 = vmatmul.msk.f32.vlgmr.msrb.gmra.mxu3 %vm1061_vm3, %v1305_v38 }
 0x3b9   : > { %v1424_v44 = vpop.f32.mrf.mxu0 }
 0x3c1   : > { %v1447_v46 = vpop.f32.mrf.mxu1 }
 0x3d1   : > { %v1378_v40 = vpop.f32.mrf.mxu2 }
 0x3d2   : > { %v1454_v41 = vadd.f32 %v1641_v39, %v1378_v40 }
 0x3d9   : > { %v1401_v42 = vpop.f32.mrf.mxu3 }
 0x3da   : > { %v1455_v43 = vadd.f32 %v1454_v41, %v1401_v42 }
 0x3dc   : > { %v1456_v45 = vadd.f32 %v1455_v43, %v1424_v44 }
 0x3de   : > { %v1457_v47 = vadd.f32 %v1456_v45, %v1447_v46 }
 0x3e0   : > { %1458 = vst.msk [vmem:[%s431_s30] sm:$0xff] %vm469_vm0, %v1457_v47 }
 0x3e1   : > { %1685 = shalt.err (!%p1682_p3)
}
 0x3e2   : > { %1590 = dma.vmem_to_hbm [thread:$0]  (%p1830_p5), %s1473_s15, 128, %s1475_s16, %s1460_s29  }
 0x3e3 PF: > { %p1596_p4 = scmp.ge.s32.totalorder %s1720_s28, 2  ;;  %s1486_s24 = sand.u32 1, %s1708_s25  }
 0x3e4   : > { %s1487_s30 = scalar_lea.sflag [#allocation3], %s1486_s24 }
 0x3e5   : > { %p1593_p7 = pnand %p1596_p4, %p1834_p6 }
 0x3e7   : > { %p1594_p8 = pneg %p1593_p7 }
 0x3e9   : > { %1703 = dma.done.wait (%p1594_p8), %s1487_s30, 128  }
 0x3ea   : > { %1705 = vsyncadd (%p1594_p8), %s1487_s30, 4294967168  ;;  %s2294_s28 = sld [smem:[#allocation6_spill]]  ;;  %s2297_s25 = smov %s1712_s26 }
 0x3eb   : > { %s2295_s20 = sld [smem:[#allocation5_spill]] }
 0x3ec   : > { %s2296_s27 = sld [smem:[#allocation7_spill]] }
 0x3f0   : > { %p23_p9 = scmp.ge.s32.totalorder %s2294_s28, 4  }
 0x3f1   : > { %s2298_s26 = smov %s2295_s20 }
 0x3f2   :  { %25 = sbr.rel (!%p23_p9) target bundleno = 3 (0x3), region = 107 }
 0x3f7   :  { %1493 = vsyncpa [#allocation3], 1 }
 0x3f8   :  { %1495 = vsyncpa [#allocation3 + $0x1], 1 }

</bundles_post_ra>
